<compile_context>
chip_gen: v7x
topology: tpu7x:2x2x1
jax: 0.10.0
libtpu: 0.0.40
codegen_flags: <defaults>
</compile_context>

<pallas_src>
import functools
import math

import jax
import jax.numpy as jnp
from jax.experimental import pallas as pl
from jax.experimental.pallas import tpu as pltpu


_TARGET_X_TILE_BYTES = 4 * 1024 * 1024     # ~4 MiB of x per block (v7x-friendly)
_DB_FOOTPRINT_CAP = 24 * 1024 * 1024       # 2 * (x_in + out + pe), double-buffered
_VMEM_LIMIT_BYTES = 40 * 1024 * 1024       # below v7x's 64 MiB physical VMEM
_SUBLANE_PACK = {4: 8, 2: 16, 1: 32}       # sublane packing by itemsize


def _build_pe_table(d_model: int, max_len: int = 5000) -> jnp.ndarray:
    """Deterministic sinusoidal PE table, identical to the PyTorch __init__."""
    position = jnp.arange(max_len, dtype=jnp.float32)[:, None]          # (max_len, 1)
    div_term = jnp.exp(
        jnp.arange(0, d_model, 2, dtype=jnp.float32)
        * (-math.log(10000.0) / d_model)
    )                                                                    # (d_model//2,)
    angles = position * div_term                                         # (max_len, d//2)
    pe = jnp.zeros((max_len, d_model), dtype=jnp.float32)
    pe = pe.at[:, 0::2].set(jnp.sin(angles))
    pe = pe.at[:, 1::2].set(jnp.cos(angles))
    return pe


# ----------------------------- kernels ------------------------------------ #

def _pe_add_kernel(x_ref, pe_ref, o_ref, *, compute_dtype):
    # x_ref/o_ref: (ts, tb, D), pe_ref: (ts, D).  Broadcast pe over the batch
    # axis in-registers so pe only streams S*D elements from HBM.
    x = x_ref[...].astype(compute_dtype)
    pe = pe_ref[...].astype(compute_dtype)
    o_ref[...] = (x + pe[:, None, :]).astype(o_ref.dtype)


def _pe_add_flat_kernel(x_ref, pe_ref, o_ref, *, batch, compute_dtype):
    # x_ref/o_ref: (ts, B*D), pe_ref: (ts, D).  Replicate pe along the lane
    # axis (small B) so the output block stays lane-dense -> unmasked stores.
    x = x_ref[...].astype(compute_dtype)
    pe = pe_ref[...].astype(compute_dtype)
    pe_row = pe if batch == 1 else jnp.concatenate([pe] * batch, axis=-1)
    o_ref[...] = (x + pe_row).astype(o_ref.dtype)


# --------------------------- tile selection -------------------------------- #

def _choose_seq_tile(S: int, row_x_bytes: int, row_pe_bytes: int) -> int:
    """Sequence rows per block (multiple of 8 unless S < 8 -> full extent)."""
    if S <= 8:
        return int(S)
    row_all = 2 * row_x_bytes + row_pe_bytes           # x + out + pe per seq row
    ts = max(8, _TARGET_X_TILE_BYTES // max(row_x_bytes, 1))
    ts = min(ts, max(8, _DB_FOOTPRINT_CAP // (2 * row_all)))
    ts = max(8, (ts // 8) * 8)
    ts = min(ts, (S // 8) * 8)        # largest 8-multiple <= S; cdiv masks the edge
    return int(ts)


def _choose_batch_tile(B: int, D: int, x_itemsize: int, pe_itemsize: int) -> int:
    """Batch rows per block for the (ts, tb, D) layout (tb == B unless too fat)."""
    def footprint(tb):
        return 2 * (2 * 8 * tb * D * x_itemsize + 8 * D * pe_itemsize)
    if footprint(B) <= _DB_FOOTPRINT_CAP:
        return int(B)
    tb_max = (_DB_FOOTPRINT_CAP // 2 - 8 * D * pe_itemsize) // (2 * 8 * D * x_itemsize)
    return int(max(8, (min(B, max(tb_max, 8)) // 8) * 8))


# ------------------------------ forward ------------------------------------ #

def positional_encoding_forward(x: jnp.ndarray, pe_table: jnp.ndarray, *,
                                native_dtype_add: bool = False,
                                donate_x: bool = False) -> jnp.ndarray:
    """x: (S, B, D).  Returns x + pe_table[:S] broadcast over batch, in x.dtype."""
    S, B, D = x.shape
    max_len, d_model = pe_table.shape
    if d_model != D:
        raise ValueError(f"pe table d_model {d_model} != x d_model {D}")
    if S > max_len:
        raise ValueError(f"seq_len {S} exceeds positional-encoding max_len {max_len}")

    x_itemsize = jnp.dtype(x.dtype).itemsize
    sublane = _SUBLANE_PACK.get(x_itemsize, 8)

    if native_dtype_add and pe_table.dtype != x.dtype:
        # Opt-in native-dtype add (e.g. bf16 on v6e/v7x).  Callers should ideally
        # pre-cast & cache the table; this cast is a convenience fallback.
        pe_table = pe_table.astype(x.dtype)
    compute_dtype = x.dtype if native_dtype_add else jnp.float32
    pe_itemsize = jnp.dtype(pe_table.dtype).itemsize

    aliases = {0: 0} if donate_x else {}
    cost = pl.CostEstimate(
        flops=S * B * D,
        transcendentals=0,
        bytes_accessed=2 * S * B * D * x_itemsize + S * D * pe_itemsize,
    )
    compiler_kwargs = dict(vmem_limit_bytes=_VMEM_LIMIT_BYTES)

    if B < sublane:
        # ---- small-batch path: lane-dense (S, B*D) view, unmasked stores ----
        F = B * D
        x_flat = x.reshape(S, F)                         # contiguous -> free
        ts = _choose_seq_tile(S, F * x_itemsize, D * pe_itemsize)
        pe_in = pe_table if ts % 8 == 0 else pe_table[:S]   # only tiny S < 8 slices
        grid = (pl.cdiv(S, ts),)
        out_flat = pl.pallas_call(
            functools.partial(_pe_add_flat_kernel, batch=B, compute_dtype=compute_dtype),
            out_shape=jax.ShapeDtypeStruct((S, F), x.dtype),
            grid=grid,
            in_specs=[
                pl.BlockSpec((ts, F), lambda s: (s, 0)),
                pl.BlockSpec((ts, D), lambda s: (s, 0)),
            ],
            out_specs=pl.BlockSpec((ts, F), lambda s: (s, 0)),
            compiler_params=pltpu.CompilerParams(
                dimension_semantics=("parallel",), **compiler_kwargs),
            cost_estimate=cost,
            input_output_aliases=aliases,
        )(x_flat, pe_in)
        return out_flat.reshape(S, B, D)

    # ---- regular path: (ts, tb, D) blocks, 2-D parallel grid --------------- #
    tb = _choose_batch_tile(B, D, x_itemsize, pe_itemsize)
    ts = _choose_seq_tile(S, tb * D * x_itemsize, D * pe_itemsize)
    pe_in = pe_table if ts % 8 == 0 else pe_table[:S]
    grid = (pl.cdiv(S, ts), pl.cdiv(B, tb))
    return pl.pallas_call(
        functools.partial(_pe_add_kernel, compute_dtype=compute_dtype),
        out_shape=jax.ShapeDtypeStruct((S, B, D), x.dtype),
        grid=grid,
        in_specs=[
            pl.BlockSpec((ts, tb, D), lambda s, b: (s, b, 0)),
            pl.BlockSpec((ts, D), lambda s, b: (s, 0)),
        ],
        out_specs=pl.BlockSpec((ts, tb, D), lambda s, b: (s, b, 0)),
        compiler_params=pltpu.CompilerParams(
            dimension_semantics=("parallel", "parallel"), **compiler_kwargs),
        cost_estimate=cost,
        input_output_aliases=aliases,
    )(x, pe_in)


# ------------------------------- demo -------------------------------------- #

if __name__ == "__main__":
    MAX_LEN = 64

    def _check(S, B, D, key, dtype=jnp.float32, rtol=1e-6, atol=1e-6, **kw):
        x = jax.random.normal(key, (S, B, D), dtype=jnp.float32).astype(dtype)
        pe_table = _build_pe_table(D, MAX_LEN)
        out = jax.block_until_ready(positional_encoding_forward(x, pe_table, **kw))
        ref = (x.astype(jnp.float32) + pe_table[:S][:, None, :]).astype(dtype)
        assert out.shape == (S, B, D) and out.dtype == x.dtype
        ok = jnp.allclose(out.astype(jnp.float32), ref.astype(jnp.float32),
                          rtol=rtol, atol=atol)
        assert ok, f"mismatch at {(S, B, D, dtype)}"

    keys = jax.random.split(jax.random.PRNGKey(0), 6)
    # Small shapes consistent with the module's forward: x is (seq, batch, d_model).
    _check(8, 2, 32, keys[0])                                  # tiny single-block, flattened small-B path
    _check(20, 2, 128, keys[1])                                # ragged S -> cdiv grid + masked edge block
    _check(5, 2, 32, keys[2])                                  # S < 8 -> full-extent block + pe slice
    _check(24, 16, 64, keys[3])                                # B >= 8 -> (ts, tb, D) blocks, 2-D grid
    _check(16, 8, 128, keys[4], dtype=jnp.bfloat16,            # bf16 activations + x donation
           rtol=2e-2, atol=2e-2, donate_x=True)
    _check(16, 2, 128, keys[5], dtype=jnp.bfloat16,            # opt-in native bf16 add (v6e/v7x)
           rtol=1e-1, atol=1e-1, native_dtype_add=True)

    print("KERNEL_OK")
</pallas_src>

<mosaic_0001>
module attributes {stable_mosaic.version = 11 : i64} {
  func.func @_pe_add_flat_kernel(%arg0: i32, %arg1: memref<8x64xf32, #tpu.memory_space<vmem>>, %arg2: memref<8x32xf32, #tpu.memory_space<vmem>>, %arg3: memref<8x64xf32, #tpu.memory_space<vmem>>) attributes {dimension_semantics = [#tpu.dimension_semantics<parallel>], iteration_bounds = array<i64: 1>, scalar_prefetch = 0 : i64, scratch_operands = 0 : i64, tpu.core_type = #tpu.core_type<tc>, window_params = [{transform_indices = @transform_0, window_bounds = array<i64: 8, 64>}, {transform_indices = @transform_1, window_bounds = array<i64: 8, 32>}, {transform_indices = @transform_2, window_bounds = array<i64: 8, 64>}]} {
    %c0 = arith.constant 0 : index
    %c0_0 = arith.constant 0 : index
    %0 = vector.load %arg1[%c0, %c0_0] : memref<8x64xf32, #tpu.memory_space<vmem>>, vector<8x64xf32>
    %c0_1 = arith.constant 0 : index
    %c0_2 = arith.constant 0 : index
    %1 = vector.load %arg2[%c0_1, %c0_2] : memref<8x32xf32, #tpu.memory_space<vmem>>, vector<8x32xf32>
    %2 = tpu.concatenate %1, %1 in 1 : vector<8x32xf32>, vector<8x32xf32> -> vector<8x64xf32>
    %3 = arith.addf %0, %2 : vector<8x64xf32>
    %c0_3 = arith.constant 0 : index
    %c0_4 = arith.constant 0 : index
    %4 = vector.load %arg3[%c0_3, %c0_4] : memref<8x64xf32, #tpu.memory_space<vmem>>, vector<8x64xf32>
    tpu.vector_store %arg3[%c0_3, %c0_4], %3 {strides = array<i32>} : memref<8x64xf32, #tpu.memory_space<vmem>>, vector<8x64xf32>,
    return
  }
  func.func @transform_0(%arg0: i32) -> (i32, i32) {
    %c0_i32 = arith.constant 0 : i32
    %c0_i32_0 = arith.constant 0 : i32
    return %arg0, %c0_i32 : i32, i32
  }
  func.func @transform_1(%arg0: i32) -> (i32, i32) {
    %c0_i32 = arith.constant 0 : i32
    %c0_i32_0 = arith.constant 0 : i32
    return %arg0, %c0_i32 : i32, i32
  }
  func.func @transform_2(%arg0: i32) -> (i32, i32) {
    %c0_i32 = arith.constant 0 : i32
    %c0_i32_0 = arith.constant 0 : i32
    return %arg0, %c0_i32 : i32, i32
  }
}

</mosaic_0001>

<bundles_post_ra>
// kernel: tpu_custom_call.1
= control target key start
LH: loop header
LB: loop body
LE: loop exit
PB: predicated region body
PF: predicated region fallthrough
CT: control target
= control target key end

     0   :  { %s98_s0 = inlined_call_operand.vmem [shape: f32[8,64], index: 0, kind: input, shape index: {}]   ;;  %s99_s1 = inlined_call_operand.vmem [shape: f32[64,32], index: 1, kind: input, shape index: {}]   ;;  %s100_s2 = inlined_call_operand.hbm [shape: f32[8,64], index: 2, kind: output, shape index: {}]  }
   0x1   :  { %v13_v0 = vld [vmem:[%s99_s1] sm:$0xff] }
   0x2   :  { %7 = vsyncpa [#allocation3], 0  ;;  %s63_s11 = smov 32   ;;  %vm18_vm0 = vcmask 261120   ;;  %v12_v1 = vld [vmem:[%s98_s0] sm:$0xff]  ;;  %s64_s14 = smov [#allocation2]  }
   0x3   :  { %15 = vrot.lane.b32.xlu0 %v13_v0, %s63_s11  ;;  %s29_s15 = sshll.u32 %s64_s14, 4  ;;  %vm21_vm1 = vcmask 523264   ;;  %s30_s15 = int_to_ptr.vmem [resolvable:$true] %s29_s15 }
   0x4   :  { %s39_s16 = scalar_lea.vmem %s30_s15, 128  ;;  %p44_p1 = scmp.lt.s32.totalorder %s30_s15, %s30_s15 }
   0x5   :  { %p40_p0 = scmp.ne.s32.totalorder %s30_s15, %s39_s16  ;;  %p45_p2 = scmp.lt.s32.totalorder %s39_s16, %s39_s16 }
   0x7   :  { %p46_p3 = por %p45_p2, %p44_p1 }
   0x9   :  { %p47_p4 = pnand %p46_p3, %p40_p0 }
  0x75   :  { %v16_v2 = vpop.permute.xlu0 %15 }
  0x76   :  { %v19_v3 = vsel %vm18_vm0, %v13_v0, %v16_v2 }
  0x77   :  { %v20_v4 = vadd.f32 %v19_v3, %v12_v1 }
  0x79   :  { %22 = vst.msk [vmem:[#allocation2] sm:$0xff] %vm21_vm1, %v20_v4 }
  0x7a   :  { %50 = shalt.err (!%p47_p4)
}
  0x7b   :  { %s51_s18 = scalar_lea.hbm %s100_s2, 128 }
  0x7c   :  { %p52_p5 = scmp.ne.s32.totalorder %s100_s2, %s51_s18  ;;  %p55_p6 = scmp.lt.u32.totalorder %s51_s18, %s100_s2 }
  0x7e   :  { %p57_p7 = pnand %p55_p6, %p52_p5 }
  0x80   :  { %60 = shalt.err (!%p57_p7)
}
  0x81   :  { %32 = dma.vmem_to_hbm [thread:$0]  %s30_s15, 128, %s100_s2, [#allocation3]  }
  0x82   :  { %61 = dma.done.wait [#allocation3], 128  }
  0x83   :  { %62 = vsyncadd [#allocation3], 4294967168 }
  0x84   :  { %36 = vsyncpa [#allocation3], 1 }

</bundles_post_ra>
